<compile_context>
chip_gen: v6e
topology: v6e:2x2x1
jax: 0.10.0
libtpu: 0.0.40
codegen_flags: <defaults>
</compile_context>

<pallas_src>
import functools

import jax
import jax.numpy as jnp
from jax.experimental import pallas as pl
from jax.experimental.pallas import tpu as pltpu

EMBED_DIM = 10
P_IN = 45 + EMBED_DIM * 3 - 6   # 69
H1 = 100
H2 = 60
N_POKES = 12
N_FEATS = 46                    # 552 / 12
LANES = 128                     # padded GEMM width / lane width
ONEHOT_OFF = N_FEATS            # first lane used by the folded one-hot ids


def _round_up(x, m):
    return (x + m - 1) // m * m


# ----------------------------- Pallas kernel -------------------------------
def _poke_net_kernel(pokes_ref, w1_ref, b1_ref, w2_ref, b2_ref, o_ref, *,
                     poke_off, abil_off, item_off):
    # pokes: [TILE_M, 46] f32 raw per-poke features.
    # w1:    [128, 128] bf16 folded layer-1 weights (embedding tables pre-multiplied in).
    # b1/b2: [1, 128] f32 zero-padded biases; w2: [128, 128] bf16 zero-padded.
    # o:     [TILE_M, 128] f32 lane-dense output (cols 0:60 valid).
    pokes = pokes_ref[...]
    m = pokes.shape[0]

    lane = jax.lax.broadcasted_iota(jnp.int32, (m, LANES), 1)   # single shared iota

    # Lanes 0..45 carry the raw features (lanes whose w1_fold rows are zero are inert);
    # lanes 46..127 start at zero and receive the three scaled one-hot selectors.
    base = jnp.concatenate(
        [pokes, jnp.zeros((m, LANES - N_FEATS), jnp.float32)], axis=-1)   # [m, 128]

    # inputs[39:44] * inputs[44]  (per-row scale, cannot be folded into the weights).
    base = jnp.where((lane >= 39) & (lane < 44), base * pokes[:, 44:45], base)

    # One-hot id selectors; ability/item per-row scales are folded into the one-hot
    # values, the embedding tables themselves live inside w1_fold.
    pid = pokes[:, 0:1].astype(jnp.int32)
    aid = pokes[:, 1:2].astype(jnp.int32)
    iid = pokes[:, 37:38].astype(jnp.int32)
    onehots = ((lane == pid + poke_off).astype(jnp.float32)
               + (lane == aid + abil_off).astype(jnp.float32) * pokes[:, 2:3]
               + (lane == iid + item_off).astype(jnp.float32) * pokes[:, 38:39])

    x = (base + onehots).astype(jnp.bfloat16)                   # [m, 128] bf16

    # Two MXU GEMMs; f32 accumulate / bias / relu on the VPU.
    h1 = jnp.dot(x, w1_ref[...], preferred_element_type=jnp.float32) + b1_ref[...]
    h1 = jnp.maximum(h1, 0.0)
    h2 = jnp.dot(h1.astype(jnp.bfloat16), w2_ref[...],
                 preferred_element_type=jnp.float32) + b2_ref[...]
    h2 = jnp.maximum(h2, 0.0)

    # torch.mul(x, inputs[45]); lane-dense 128-wide store.
    o_ref[...] = h2 * pokes[:, 45:46]


def _choose_tiling(rows):
    # Per-grid-step pipeline overhead (~0.35us) dwarfs the tile's MXU work, so use one
    # big tile whenever possible; beyond 512 rows use 512-row tiles so the "parallel"
    # grid axis has >=2 tiles and shards across v7x's two TensorCores.
    if rows <= 512:
        tile = max(8, _round_up(rows, 8))
        return tile, tile
    return 512, _round_up(rows, 512)


def _poke_net_call(pokes, w1f, b1p, w2p, b2p, *, poke_off, abil_off, item_off):
    rows = pokes.shape[0]
    tile_m, m_pad = _choose_tiling(rows)
    if m_pad > rows:
        pokes = jnp.pad(pokes, ((0, m_pad - rows), (0, 0)))     # row pad only; lanes stay 46
    n_tiles = m_pad // tile_m

    kernel = functools.partial(_poke_net_kernel, poke_off=poke_off,
                               abil_off=abil_off, item_off=item_off)

    flops = 2 * m_pad * LANES * LANES * 2
    bytes_accessed = int(m_pad * N_FEATS * 4 + w1f.size * 2 + w2p.size * 2
                         + b1p.size * 4 + b2p.size * 4 + m_pad * LANES * 4)

    out = pl.pallas_call(
        kernel,
        out_shape=jax.ShapeDtypeStruct((m_pad, LANES), jnp.float32),
        grid=(n_tiles,),
        in_specs=[
            pl.BlockSpec((tile_m, N_FEATS), lambda i: (i, 0)),   # raw poke rows (46 lanes in HBM)
            pl.BlockSpec((LANES, LANES), lambda i: (0, 0)),      # w1_fold  (resident)
            pl.BlockSpec((1, LANES), lambda i: (0, 0)),          # b1       (resident)
            pl.BlockSpec((LANES, LANES), lambda i: (0, 0)),      # w2       (resident)
            pl.BlockSpec((1, LANES), lambda i: (0, 0)),          # b2       (resident)
        ],
        out_specs=pl.BlockSpec((tile_m, LANES), lambda i: (i, 0)),
        compiler_params=pltpu.CompilerParams(dimension_semantics=("parallel",)),
        cost_estimate=pl.CostEstimate(flops=flops, transcendentals=0,
                                      bytes_accessed=bytes_accessed),
    )(pokes, w1f, b1p, w2p, b2p)
    return out, rows


# ------------------------------ params & glue --------------------------------
def init_params(key, poke_len, move_len, item_len, ability_len):
    assert poke_len + ability_len + item_len <= LANES - N_FEATS, (
        "folded one-hot lanes must fit in 128 lanes")
    # TODO(synk): for vocabularies larger than 82 total, fall back to separate bf16
    # one-hot embed dots instead of the weight fold.
    ks = jax.random.split(key, 8)
    ptab = jax.random.normal(ks[0], (poke_len, EMBED_DIM), jnp.float32)
    atab = jax.random.normal(ks[1], (ability_len, EMBED_DIM), jnp.float32)
    mtab = jax.random.normal(ks[2], (move_len, EMBED_DIM), jnp.float32)   # unused in forward (matches reference)
    itab = jax.random.normal(ks[3], (item_len, EMBED_DIM), jnp.float32)
    w1 = jax.random.normal(ks[4], (P_IN, H1), jnp.float32) * 0.1
    b1 = jax.random.normal(ks[5], (1, H1), jnp.float32) * 0.1
    w2 = jax.random.normal(ks[6], (H1, H2), jnp.float32) * 0.1
    b2 = jax.random.normal(ks[7], (1, H2), jnp.float32) * 0.1

    poke_off = ONEHOT_OFF
    abil_off = poke_off + poke_len
    item_off = abil_off + ability_len

    # Fold the embedding tables into the layer-1 weight matrix.
    # Original x layout: [pe 0:10 | ae 10:20 | raw 20:54 | ie 54:64 | sc5 64:69].
    w1f = jnp.zeros((LANES, LANES), jnp.float32)
    w1f = w1f.at[3:37, :H1].set(w1[20:54])                       # inputs[3:37]
    w1f = w1f.at[39:44, :H1].set(w1[64:69])                      # inputs[39:44] (row-scaled in kernel)
    w1f = w1f.at[poke_off:poke_off + poke_len, :H1].set(ptab @ w1[0:10])
    w1f = w1f.at[abil_off:abil_off + ability_len, :H1].set(atab @ w1[10:20])
    w1f = w1f.at[item_off:item_off + item_len, :H1].set(itab @ w1[54:64])

    return {
        "poke_embed": ptab, "ability_embed": atab, "move_embed": mtab, "item_embed": itab,
        "w1": w1, "b1": b1, "w2": w2, "b2": b2,
        # MXU-friendly copies, built once.
        "w1_fold": w1f.astype(jnp.bfloat16),
        "b1p": jnp.zeros((1, LANES), jnp.float32).at[:, :H1].set(b1),
        "w2p": jnp.zeros((LANES, LANES), jnp.bfloat16).at[:H1, :H2].set(w2.astype(jnp.bfloat16)),
        "b2p": jnp.zeros((1, LANES), jnp.float32).at[:, :H2].set(b2),
    }


def network_forward(inputs_flat, params):
    """Mirrors Network.forward -> poke_forward.

    inputs_flat: [552] (single observation, as in the PyTorch module) or [B, 552]
    (batched path — amortizes launch overhead and fills the MXU).
    Returns [12, 60] or [B, 12, 60].
    """
    single = inputs_flat.ndim == 1
    flat = inputs_flat[None] if single else inputs_flat
    b = flat.shape[0]

    pokes = flat[:, : N_POKES * N_FEATS].reshape(b * N_POKES, N_FEATS).astype(jnp.float32)

    poke_off = ONEHOT_OFF
    abil_off = poke_off + params["poke_embed"].shape[0]
    item_off = abil_off + params["ability_embed"].shape[0]

    out_padded, rows = _poke_net_call(
        pokes, params["w1_fold"], params["b1p"], params["w2p"], params["b2p"],
        poke_off=poke_off, abil_off=abil_off, item_off=item_off)

    # NOTE: consumers that tolerate padding should read the [m_pad, 128] slab directly;
    # the slice below only exists to match the reference module's [..., 60] output.
    out = out_padded[:rows, :H2].reshape(b, N_POKES, H2)
    return out[0] if single else out


# ------------------------------ main ----------------------------------------
if __name__ == "__main__":
    poke_len, move_len, item_len, ability_len = 32, 16, 16, 16
    B = 8  # 8 * 12 = 96 MLP rows -> one 96-row tile, no row padding needed

    key = jax.random.PRNGKey(0)
    k_param, k_feat, k_pid, k_aid, k_iid = jax.random.split(key, 5)
    params = init_params(k_param, poke_len, move_len, item_len, ability_len)

    feats = jax.random.uniform(k_feat, (B, N_POKES, N_FEATS), jnp.float32)
    feats = feats.at[..., 0].set(
        jax.random.randint(k_pid, (B, N_POKES), 0, poke_len).astype(jnp.float32))
    feats = feats.at[..., 1].set(
        jax.random.randint(k_aid, (B, N_POKES), 0, ability_len).astype(jnp.float32))
    feats = feats.at[..., 37].set(
        jax.random.randint(k_iid, (B, N_POKES), 0, item_len).astype(jnp.float32))
    inputs_flat = feats.reshape(B, N_POKES * N_FEATS)            # [B, 552]

    fwd = jax.jit(network_forward)
    out = jax.block_until_ready(fwd(inputs_flat, params))
    assert out.shape == (B, N_POKES, H2)

    # ---- reference checks (pure JAX) ----
    pk = inputs_flat.reshape(B * N_POKES, N_FEATS)
    hp = jax.lax.Precision.HIGHEST

    # (a) Exact replica of the kernel's precision path (folded bf16 weights) — tight.
    poke_off = ONEHOT_OFF
    abil_off = poke_off + poke_len
    item_off = abil_off + ability_len
    lane = jnp.arange(LANES)[None, :]
    base = jnp.pad(pk, ((0, 0), (0, LANES - N_FEATS)))
    base = jnp.where((lane >= 39) & (lane < 44), base * pk[:, 44:45], base)
    onehots = ((lane == pk[:, 0:1].astype(jnp.int32) + poke_off).astype(jnp.float32)
               + (lane == pk[:, 1:2].astype(jnp.int32) + abil_off).astype(jnp.float32) * pk[:, 2:3]
               + (lane == pk[:, 37:38].astype(jnp.int32) + item_off).astype(jnp.float32) * pk[:, 38:39])
    xb = (base + onehots).astype(jnp.bfloat16)
    h1k = jnp.maximum(jnp.dot(xb, params["w1_fold"], precision=hp,
                              preferred_element_type=jnp.float32) + params["b1p"], 0.0)
    h2k = jnp.maximum(jnp.dot(h1k.astype(jnp.bfloat16), params["w2p"], precision=hp,
                              preferred_element_type=jnp.float32) + params["b2p"], 0.0)
    ref_kernel = (h2k * pk[:, 45:46])[:, :H2].reshape(B, N_POKES, H2)
    assert jnp.allclose(out, ref_kernel, atol=5e-3, rtol=5e-3)

    # (b) Full-f32 reference of the original module semantics (loose: documents the
    # intended bf16-weight / folded-table approximation).
    pe = params["poke_embed"][pk[:, 0].astype(jnp.int32)]
    ae = params["ability_embed"][pk[:, 1].astype(jnp.int32)] * pk[:, 2:3]
    ie = params["item_embed"][pk[:, 37].astype(jnp.int32)] * pk[:, 38:39]
    x_ref = jnp.concatenate(
        [pe, ae, pk[:, 3:37], ie, pk[:, 39:44] * pk[:, 44:45]], axis=-1)
    h1f = jnp.maximum(jnp.dot(x_ref, params["w1"], precision=hp) + params["b1"], 0.0)
    h2f = jnp.maximum(jnp.dot(h1f, params["w2"], precision=hp) + params["b2"], 0.0)
    ref_f32 = (h2f * pk[:, 45:46]).reshape(B, N_POKES, H2)
    assert jnp.allclose(out, ref_f32, atol=1e-1, rtol=1e-1)

    print("KERNEL_OK")
</pallas_src>

<mosaic_0001>
module attributes {stable_mosaic.version = 11 : i64} {
  func.func @_poke_net_kernel(%arg0: i32, %arg1: memref<96x46xf32, #tpu.memory_space<vmem>>, %arg2: memref<128x128xbf16, #tpu.memory_space<vmem>>, %arg3: memref<1x128xf32, #tpu.memory_space<vmem>>, %arg4: memref<128x128xbf16, #tpu.memory_space<vmem>>, %arg5: memref<1x128xf32, #tpu.memory_space<vmem>>, %arg6: memref<96x128xf32, #tpu.memory_space<vmem>>) attributes {dimension_semantics = [#tpu.dimension_semantics<parallel>], iteration_bounds = array<i64: 1>, scalar_prefetch = 0 : i64, scratch_operands = 0 : i64, tpu.core_type = #tpu.core_type<tc>, window_params = [{transform_indices = @transform_0, window_bounds = array<i64: 96, 46>}, {pipeline_mode = #tpu.pipeline_mode<synchronous>, transform_indices = @transform_1, window_bounds = array<i64: 128, 128>}, {pipeline_mode = #tpu.pipeline_mode<synchronous>, transform_indices = @transform_2, window_bounds = array<i64: 1, 128>}, {pipeline_mode = #tpu.pipeline_mode<synchronous>, transform_indices = @transform_3, window_bounds = array<i64: 128, 128>}, {pipeline_mode = #tpu.pipeline_mode<synchronous>, transform_indices = @transform_4, window_bounds = array<i64: 1, 128>}, {transform_indices = @transform_5, window_bounds = array<i64: 96, 128>}]} {
    %c0 = arith.constant 0 : index
    %c0_0 = arith.constant 0 : index
    %0 = vector.load %arg1[%c0, %c0_0] : memref<96x46xf32, #tpu.memory_space<vmem>>, vector<96x46xf32>
    %1 = tpu.iota {dimensions = array<i32: 1>} : vector<96x128xi32>
    %cst = arith.constant 0.000000e+00 : f32
    %2 = vector.broadcast %cst : f32 to vector<96x82xf32>
    %3 = tpu.concatenate %0, %2 in 1 : vector<96x46xf32>, vector<96x82xf32> -> vector<96x128xf32>
    %c39_i32 = arith.constant 39 : i32
    %4 = vector.broadcast %c39_i32 : i32 to vector<96x128xi32>
    %5 = arith.cmpi sge, %1, %4 : vector<96x128xi32>
    %c44_i32 = arith.constant 44 : i32
    %6 = vector.broadcast %c44_i32 : i32 to vector<96x128xi32>
    %7 = arith.cmpi slt, %1, %6 : vector<96x128xi32>
    %8 = arith.andi %5, %7 : vector<96x128xi1>
    %9 = vector.extract_strided_slice %0 {offsets = [0, 44], sizes = [96, 1], strides = [1, 1]} : vector<96x46xf32> to vector<96x1xf32>
    %10 = vector.broadcast %9 : vector<96x1xf32> to vector<96x128xf32>
    %11 = arith.mulf %3, %10 : vector<96x128xf32>
    %12 = arith.select %8, %11, %3 : vector<96x128xi1>, vector<96x128xf32>
    %13 = vector.extract_strided_slice %0 {offsets = [0, 0], sizes = [96, 1], strides = [1, 1]} : vector<96x46xf32> to vector<96x1xf32>
    %14 = arith.fptosi %13 : vector<96x1xf32> to vector<96x1xi32>
    %15 = vector.extract_strided_slice %0 {offsets = [0, 1], sizes = [96, 1], strides = [1, 1]} : vector<96x46xf32> to vector<96x1xf32>
    %16 = arith.fptosi %15 : vector<96x1xf32> to vector<96x1xi32>
    %17 = vector.extract_strided_slice %0 {offsets = [0, 37], sizes = [96, 1], strides = [1, 1]} : vector<96x46xf32> to vector<96x1xf32>
    %18 = arith.fptosi %17 : vector<96x1xf32> to vector<96x1xi32>
    %c46_i32 = arith.constant 46 : i32
    %19 = vector.broadcast %c46_i32 : i32 to vector<96x1xi32>
    %20 = arith.addi %14, %19 : vector<96x1xi32>
    %21 = vector.broadcast %20 : vector<96x1xi32> to vector<96x128xi32>
    %22 = arith.cmpi eq, %1, %21 : vector<96x128xi32>
    %23 = arith.extui %22 : vector<96x128xi1> to vector<96x128xi32>
    %24 = arith.sitofp %23 : vector<96x128xi32> to vector<96x128xf32>
    %c78_i32 = arith.constant 78 : i32
    %25 = vector.broadcast %c78_i32 : i32 to vector<96x1xi32>
    %26 = arith.addi %16, %25 : vector<96x1xi32>
    %27 = vector.broadcast %26 : vector<96x1xi32> to vector<96x128xi32>
    %28 = arith.cmpi eq, %1, %27 : vector<96x128xi32>
    %29 = arith.extui %28 : vector<96x128xi1> to vector<96x128xi32>
    %30 = arith.sitofp %29 : vector<96x128xi32> to vector<96x128xf32>
    %31 = vector.extract_strided_slice %0 {offsets = [0, 2], sizes = [96, 1], strides = [1, 1]} : vector<96x46xf32> to vector<96x1xf32>
    %32 = vector.broadcast %31 : vector<96x1xf32> to vector<96x128xf32>
    %33 = arith.mulf %30, %32 : vector<96x128xf32>
    %34 = arith.addf %24, %33 : vector<96x128xf32>
    %c94_i32 = arith.constant 94 : i32
    %35 = vector.broadcast %c94_i32 : i32 to vector<96x1xi32>
    %36 = arith.addi %18, %35 : vector<96x1xi32>
    %37 = vector.broadcast %36 : vector<96x1xi32> to vector<96x128xi32>
    %38 = arith.cmpi eq, %1, %37 : vector<96x128xi32>
    %39 = arith.extui %38 : vector<96x128xi1> to vector<96x128xi32>
    %40 = arith.sitofp %39 : vector<96x128xi32> to vector<96x128xf32>
    %41 = vector.extract_strided_slice %0 {offsets = [0, 38], sizes = [96, 1], strides = [1, 1]} : vector<96x46xf32> to vector<96x1xf32>
    %42 = vector.broadcast %41 : vector<96x1xf32> to vector<96x128xf32>
    %43 = arith.mulf %40, %42 : vector<96x128xf32>
    %44 = arith.addf %34, %43 : vector<96x128xf32>
    %45 = arith.addf %12, %44 : vector<96x128xf32>
    %46 = arith.truncf %45 : vector<96x128xf32> to vector<96x128xbf16>
    %c0_1 = arith.constant 0 : index
    %c0_2 = arith.constant 0 : index
    %47 = vector.load %arg2[%c0_1, %c0_2] : memref<128x128xbf16, #tpu.memory_space<vmem>>, vector<128x128xbf16>
    %cst_3 = arith.constant dense<0.000000e+00> : vector<96x128xf32>
    %48 = tpu.matmul %46, %47, %cst_3 {dimension_numbers = #tpu.dot_dimension_numbers<[1], [0], [0], [1], [0, 0, 1, 1], [], []>} : vector<96x128xbf16>, vector<128x128xbf16>, vector<96x128xf32> -> vector<96x128xf32>
    %c0_4 = arith.constant 0 : index
    %c0_5 = arith.constant 0 : index
    %49 = vector.load %arg3[%c0_4, %c0_5] : memref<1x128xf32, #tpu.memory_space<vmem>>, vector<1x128xf32>
    %50 = vector.broadcast %49 : vector<1x128xf32> to vector<96x128xf32>
    %51 = arith.addf %48, %50 : vector<96x128xf32>
    %cst_6 = arith.constant 0.000000e+00 : f32
    %52 = vector.broadcast %cst_6 : f32 to vector<96x128xf32>
    %53 = arith.maximumf %51, %52 : vector<96x128xf32>
    %54 = arith.truncf %53 : vector<96x128xf32> to vector<96x128xbf16>
    %c0_7 = arith.constant 0 : index
    %c0_8 = arith.constant 0 : index
    %55 = vector.load %arg4[%c0_7, %c0_8] : memref<128x128xbf16, #tpu.memory_space<vmem>>, vector<128x128xbf16>
    %cst_9 = arith.constant dense<0.000000e+00> : vector<96x128xf32>
    %56 = tpu.matmul %54, %55, %cst_9 {dimension_numbers = #tpu.dot_dimension_numbers<[1], [0], [0], [1], [0, 0, 1, 1], [], []>} : vector<96x128xbf16>, vector<128x128xbf16>, vector<96x128xf32> -> vector<96x128xf32>
    %c0_10 = arith.constant 0 : index
    %c0_11 = arith.constant 0 : index
    %57 = vector.load %arg5[%c0_10, %c0_11] : memref<1x128xf32, #tpu.memory_space<vmem>>, vector<1x128xf32>
    %58 = vector.broadcast %57 : vector<1x128xf32> to vector<96x128xf32>
    %59 = arith.addf %56, %58 : vector<96x128xf32>
    %cst_12 = arith.constant 0.000000e+00 : f32
    %60 = vector.broadcast %cst_12 : f32 to vector<96x128xf32>
    %61 = arith.maximumf %59, %60 : vector<96x128xf32>
    %62 = vector.extract_strided_slice %0 {offsets = [0, 45], sizes = [96, 1], strides = [1, 1]} : vector<96x46xf32> to vector<96x1xf32>
    %63 = vector.broadcast %62 : vector<96x1xf32> to vector<96x128xf32>
    %64 = arith.mulf %61, %63 : vector<96x128xf32>
    %c0_13 = arith.constant 0 : index
    %c0_14 = arith.constant 0 : index
    %65 = vector.load %arg6[%c0_13, %c0_14] : memref<96x128xf32, #tpu.memory_space<vmem>>, vector<96x128xf32>
    tpu.vector_store %arg6[%c0_13, %c0_14], %64 {strides = array<i32>} : memref<96x128xf32, #tpu.memory_space<vmem>>, vector<96x128xf32>,
    return
  }
  func.func @transform_0(%arg0: i32) -> (i32, i32) {
    %c0_i32 = arith.constant 0 : i32
    %c0_i32_0 = arith.constant 0 : i32
    return %arg0, %c0_i32 : i32, i32
  }
  func.func @transform_1(%arg0: i32) -> (i32, i32) {
    %c0_i32 = arith.constant 0 : i32
    %c0_i32_0 = arith.constant 0 : i32
    %c0_i32_1 = arith.constant 0 : i32
    return %c0_i32, %c0_i32_0 : i32, i32
  }
  func.func @transform_2(%arg0: i32) -> (i32, i32) {
    %c0_i32 = arith.constant 0 : i32
    %c0_i32_0 = arith.constant 0 : i32
    %c0_i32_1 = arith.constant 0 : i32
    return %c0_i32, %c0_i32_0 : i32, i32
  }
  func.func @transform_3(%arg0: i32) -> (i32, i32) {
    %c0_i32 = arith.constant 0 : i32
    %c0_i32_0 = arith.constant 0 : i32
    %c0_i32_1 = arith.constant 0 : i32
    return %c0_i32, %c0_i32_0 : i32, i32
  }
  func.func @transform_4(%arg0: i32) -> (i32, i32) {
    %c0_i32 = arith.constant 0 : i32
    %c0_i32_0 = arith.constant 0 : i32
    %c0_i32_1 = arith.constant 0 : i32
    return %c0_i32, %c0_i32_0 : i32, i32
  }
  func.func @transform_5(%arg0: i32) -> (i32, i32) {
    %c0_i32 = arith.constant 0 : i32
    %c0_i32_0 = arith.constant 0 : i32
    return %arg0, %c0_i32 : i32, i32
  }
}

</mosaic_0001>

<bundles_post_ra>
// kernel: network_forward.1
= control target key start
LH: loop header
LB: loop body
LE: loop exit
PB: predicated region body
PF: predicated region fallthrough
CT: control target
= control target key end

     0   :  { %v1205_v0 = vmov 44   ;;  %v1206_v3 = vmov 1   ;;  %v1207_v22 = vmov 37   ;;  %v1208_v26 = vmov 0   ;;  %s1798_s0 = inlined_call_operand.vmem [shape: f32[96,46], index: 0, kind: input, shape index: {}]   ;;  %s1799_s1 = inlined_call_operand.vmem [shape: bf16[128,128], index: 1, kind: input, shape index: {}]   ;;  %s1800_s3 = inlined_call_operand.vmem [shape: bf16[128,128], index: 3, kind: input, shape index: {}]   ;;  %s1801_s2 = inlined_call_operand.vmem [shape: f32[1,128], index: 2, kind: input, shape index: {}]   ;;  %s1802_s4 = inlined_call_operand.vmem [shape: f32[1,128], index: 4, kind: input, shape index: {}]   ;;  %s1803_s5 = inlined_call_operand.vmem [shape: f32[96,128], index: 5, kind: output, shape index: {}]  }
   0x1   :  { %1150 = vset.pattern.permute.xlu0 %v1205_v0  ;;  %v1247_v1 = vld [vmem:[%s1798_s0 + $0x8] sm:$0xff]  ;;  %v1252_v2 = vld [vmem:[%s1798_s0 + $0x10] sm:$0xff]  ;;  %1141 = vset.pattern.permute.xlu1 %v1206_v3  ;;  %v1258_v4 = vld [vmem:[%s1798_s0 + $0x20] sm:$0xff]  ;;  %v1209_v31 = vmov 2   ;;  %v1210_v58 = vmov 38   ;;  %vm35_vm2 = vcmask 375808  }
   0x2   :  { %58 = vperm.xlu0 %1150, %v1247_v1   ;;  %v1113_v5 = vtrunc.f32 %v1252_v2  ;;  %v1117_v6 = vtrunc.f32 %v1258_v4  ;;  %v1266_v7 = vld [vmem:[%s1798_s0 + $0x18] sm:$0xff]  ;;  %v1271_v8 = vld [vmem:[%s1798_s0 + $0x30] sm:$0xff]  ;;  %v1111_v14 = vtrunc.f32 %v1247_v1  ;;  %v1283_v15 = vld [vmem:[%s1798_s0] sm:$0xff] }
   0x3   :  { %v1115_v9 = vtrunc.f32 %v1266_v7  ;;  %v1121_v10 = vtrunc.f32 %v1271_v8  ;;  %v1109_v20 = vtrunc.f32 %v1283_v15  ;;  %v1297_v28 = vld [vmem:[%s1798_s0 + $0x38] sm:$0xff]  ;;  %v1305_v32 = vld [vmem:[%s1798_s0 + $0x48] sm:$0xff]  ;;  %v1333_v48 = vld [vmem:[%s1798_s0 + $0x40] sm:$0xff] }
   0x4   :  { %v1114_v11 = vcvt.f32.s32 %v1113_v5  ;;  %v1275_v12 = vcvt.f32.s32 %v1117_v6  ;;  %v1112_v21 = vcvt.f32.s32 %v1111_v14  ;;  %v1123_v30 = vtrunc.f32 %v1297_v28  ;;  %v1321_v42 = vld [vmem:[%s1798_s0 + $0x28] sm:$0xff]  ;;  %v1338_v49 = vld [vmem:[%s1798_s0 + $0x50] sm:$0xff]  ;;  %v1183_v59 = vld [vmem:[%s1799_s1 + $0x38] sm:$0xff]  }
   0x5   :  { %v1277_v13 = vcvt.f32.s32 %v1115_v9  ;;  %v1287_v18 = vcvt.f32.s32 %v1121_v10  ;;  %v1110_v24 = vcvt.f32.s32 %v1109_v20  ;;  %v1127_v36 = vtrunc.f32 %v1305_v32  ;;  %1053 = vmatprep.subr.bf16.mxu0 %v1183_v59  ;;  %v1184_v61 = vld [vmem:[%s1799_s1 + $0x30] sm:$0xff]   ;;  %v1185_v62 = vld [vmem:[%s1799_s1 + $0x28] sm:$0xff]   ;;  %v1186_v63 = vld [vmem:[%s1799_s1 + $0x20] sm:$0xff]  }
   0x6   :  { %63 = vperm.xlu0 %1150, %v1252_v2   ;;  %v233_v16 = vadd.s32 78, %v1114_v11  ;;  %v391_v17 = vadd.s32 94, %v1275_v12  ;;  %v148_v25 = vadd.s32 46, %v1112_v21  ;;  %v232_v29 = vadd.s32 78, %v1112_v21  ;;  %1054 = vmatpush3.bf16.msra.mxu0 %v1183_v59  ;;  %v1187_v5 = vld [vmem:[%s1799_s1 + $0x18] sm:$0xff]   ;;  %v1188_v6 = vld [vmem:[%s1799_s1 + $0x10] sm:$0xff]  }
   0x7   :  { %v234_v19 = vadd.s32 78, %v1277_v13  ;;  %v393_v23 = vadd.s32 94, %v1287_v18  ;;  %v231_v27 = vadd.s32 78, %v1110_v24  ;;  %v387_v33 = vadd.s32 94, %v1110_v24  ;;  %1055 = vmatprep.subr.bf16.mxu0 %v1184_v61  ;;  %v1386_v9 = vld [vmem:[%s1798_s0 + $0x58] sm:$0xff]  ;;  %v1190_v14 = vld [vmem:[%s1799_s1] sm:$0xff]  }
   0x8   :  { %250 = vperm.xlu1 %1141, %v233_v16   ;;  %v235_v34 = vadd.s32 78, %v1275_v12  ;;  %v1309_v35 = vcvt.f32.s32 %v1123_v30  ;;  %v388_v37 = vadd.s32 94, %v1112_v21  ;;  %v1314_v39 = vcvt.f32.s32 %v1127_v36 }
   0x9   :  { %v150_v40 = vadd.s32 46, %v1277_v13  ;;  %v147_v43 = vadd.s32 46, %v1110_v24  ;;  %v1119_v44 = vtrunc.f32 %v1321_v42  ;;  %v149_v45 = vadd.s32 46, %v1114_v11 }
   0xa   :  { %1156 = vset.pattern.permute.xlu0 %v1207_v22  ;;  %v238_v38 = vadd.s32 78, %v1309_v35  ;;  %v240_v41 = vadd.s32 78, %v1314_v39  ;;  %v389_v47 = vadd.s32 94, %v1114_v11  ;;  %v1125_v51 = vtrunc.f32 %v1333_v48  ;;  %1056 = vmatpush3.bf16.msra.mxu0 %v1184_v61  ;;  %v1189_v11 = vld [vmem:[%s1799_s1 + $0x8] sm:$0xff]  }
   0xb   :  { %412 = vperm.xlu0 %1156, %v391_v17   ;;  %v1328_v46 = vcvt.f32.s32 %v1119_v44  ;;  %v390_v52 = vadd.s32 94, %v1277_v13  ;;  %v1129_v53 = vtrunc.f32 %v1338_v49  ;;  %v154_v54 = vadd.s32 46, %v1309_v35  ;;  %1057 = vmatprep.subr.bf16.mxu0 %v1185_v62 }
   0xc   :  { %253 = vperm.xlu1 %1141, %v234_v19   ;;  %v1346_v55 = vcvt.f32.s32 %v1125_v51  ;;  %v237_v13 = vadd.s32 78, %v1287_v18  ;;  %v151_v16 = vadd.s32 46, %v1275_v12  ;;  %v153_v17 = vadd.s32 46, %v1287_v18 }
   0xd   :  { %v152_v50 = vadd.s32 46, %v1328_v46  ;;  %v1348_v56 = vcvt.f32.s32 %v1129_v53  ;;  %v236_v10 = vadd.s32 78, %v1328_v46  ;;  %v392_v12 = vadd.s32 94, %v1328_v46 }
   0xe   :  { %v155_v57 = vadd.s32 46, %v1346_v55  ;;  %1058 = vmatpush3.bf16.msra.mxu0 %v1185_v62  ;;  %v394_v19 = vadd.s32 94, %v1309_v35  ;;  %v395_v53 = vadd.s32 94, %v1346_v55  ;;  %v396_v59 = vadd.s32 94, %v1314_v39 }
   0xf   :  { %418 = vperm.xlu0 %1156, %v393_v23   ;;  %v157_v60 = vadd.s32 46, %v1348_v56  ;;  %1059 = vmatprep.subr.bf16.mxu0 %v1186_v63 }
  0x10   :  { %1142 = vset.pattern.permute.xlu1 %v1208_v26 }
  0x11   :  { %163 = vperm.xlu1 %1142, %v148_v25  }
  0x12   :  { %1060 = vmatpush3.bf16.msra.mxu0 %v1186_v63 }
  0x13   :  { %1160 = vset.pattern.permute.xlu0 %v1206_v3  ;;  %1061 = vmatprep.subr.bf16.mxu0 %v1187_v5 }
  0x14   :  { %244 = vperm.xlu0 %1160, %v231_v27  }
  0x15   :  { %1143 = vset.pattern.permute.xlu1 %v1209_v31 }
  0x16   :  { %316 = vperm.xlu1 %1143, %v1283_v15   ;;  %1062 = vmatpush3.bf16.msra.mxu0 %v1187_v5 }
  0x17   :  { %1063 = vmatprep.subr.bf16.mxu0 %v1188_v6 }
  0x18   :  { %247 = vperm.xlu0 %1160, %v232_v29  }
  0x1a   :  { %1144 = vset.pattern.permute.xlu1 %v1207_v22  ;;  %1064 = vmatpush3.bf16.msra.mxu0 %v1188_v6  ;;  %v33_v6 = vlaneseq }
  0x1b   :  { %400 = vperm.xlu1 %1144, %v387_v33   ;;  %1065 = vmatprep.subr.bf16.mxu0 %v1189_v11  ;;  %v239_v33 = vadd.s32 78, %v1346_v55 }
  0x1c   :  { %256 = vperm.xlu0 %1160, %v235_v34   ;;  %v1131_v34 = vtrunc.f32 %v1386_v9 }
  0x1e   :  { %1066 = vmatpush3.bf16.msra.mxu0 %v1189_v11 }
  0x1f   :  { %403 = vperm.xlu1 %1144, %v388_v37   ;;  %1067 = vmatprep.subr.bf16.mxu0 %v1190_v14  ;;  %v241_v37 = vadd.s32 78, %v1348_v56 }
  0x20   :  { %265 = vperm.xlu0 %1160, %v238_v38   ;;  %v1132_v38 = vcvt.f32.s32 %v1131_v34 }
  0x22   :  { %1068 = vmatpush3.bf16.msra.mxu0 %v1190_v14  ;;  %v158_v62 = vadd.s32 46, %v1132_v38  ;;  %v398_v14 = vadd.s32 94, %v1132_v38 }
  0x23   :  { %1145 = vset.pattern.permute.xlu1 %v1208_v26 }
  0x24   :  { %169 = vperm.xlu1 %1145, %v150_v40   ;;  %271 = vperm.xlu0 %1160, %v240_v41  }
  0x28   :  { %1146 = vset.pattern.permute.xlu1 %v1209_v31  ;;  %1167 = vset.pattern.permute.xlu0 %v1208_v26 }
  0x29   :  { %324 = vperm.xlu1 %1146, %v1252_v2   ;;  %160 = vperm.xlu0 %1167, %v147_v43   ;;  %v242_v43 = vadd.s32 78, %v1132_v38 }
  0x2d   :  { %1147 = vset.pattern.permute.xlu1 %v1207_v22  ;;  %166 = vperm.xlu0 %1167, %v149_v45  }
  0x2e   :  { %406 = vperm.xlu1 %1147, %v389_v47  }
  0x31   :  { %175 = vperm.xlu0 %1167, %v152_v50  }
  0x32   :  { %409 = vperm.xlu1 %1147, %v390_v52  }
  0x35   :  { %181 = vperm.xlu0 %1167, %v154_v54  }
  0x36   :  { %1148 = vset.pattern.permute.xlu1 %v1210_v58 }
  0x37   :  { %476 = vperm.xlu1 %1148, %v1247_v1  }
  0x39   :  { %184 = vperm.xlu0 %1167, %v155_v57  }
  0x3b   :  { %1149 = vset.pattern.permute.xlu1 %v1205_v0 }
  0x3c   :  { %53 = vperm.xlu1 %1149, %v1283_v15  }
  0x3d   :  { %190 = vperm.xlu0 %1167, %v157_v60  }
  0x40   :  { %1151 = vset.pattern.permute.xlu1 %v1210_v58 }
  0x41   :  { %480 = vperm.xlu1 %1151, %v1252_v2   ;;  %1171 = vset.pattern.permute.xlu0 %v1209_v31 }
  0x42   :  { %320 = vperm.xlu0 %1171, %v1247_v1  }
  0x45   :  { %484 = vperm.xlu1 %1151, %v1266_v7  }
  0x46   :  { %328 = vperm.xlu0 %1171, %v1266_v7  }
  0x49   :  { %1152 = vset.pattern.permute.xlu1 %v1205_v0 }
  0x4a   :  { %68 = vperm.xlu1 %1152, %v1266_v7   ;;  %352 = vperm.xlu0 %1171, %v1305_v32  }
  0x4e   :  { %1153 = vset.pattern.permute.xlu1 %v1206_v3  ;;  %360 = vperm.xlu0 %1171, %v1386_v9  }
  0x4f   :  { %259 = vperm.xlu1 %1153, %v236_v10   ;;  %v397_v10 = vadd.s32 94, %v1348_v56  ;;  %v1211_v56 = vmov 0.0  }
  0x52   :  { %1174 = vset.pattern.permute.xlu0 %v1210_v58 }
  0x53   :  { %262 = vperm.xlu1 %1153, %v237_v13   ;;  %472 = vperm.xlu0 %1174, %v1283_v15   ;;  %v1495_v13 = vand.u32 127, %v33_v6 }
  0x55   :  { %vm48_vm4 = vcmp.ge.s32.totalorder %v1495_v13, 39  ;;  %vm49_vm5 = vcmp.lt.s32.totalorder %v1495_v13, 44 }
  0x57   :  { %1154 = vset.pattern.permute.xlu1 %v1208_v26  ;;  %492 = vperm.xlu0 %1174, %v1321_v42  }
  0x58   :  { %172 = vperm.xlu1 %1154, %v151_v16  }
  0x5b   :  { %496 = vperm.xlu0 %1174, %v1271_v8  }
  0x5c   :  { %1155 = vset.pattern.permute.xlu1 %v1209_v31 }
  0x5d   :  { %332 = vperm.xlu1 %1155, %v1258_v4  }
  0x5f   :  { %504 = vperm.xlu0 %1174, %v1333_v48  }
  0x61   :  { %336 = vperm.xlu1 %1155, %v1321_v42  }
  0x63   :  { %1176 = vset.pattern.permute.xlu0 %v1205_v0 }
  0x64   :  { %83 = vperm.xlu0 %1176, %v1271_v8  }
  0x65   :  { %1157 = vset.pattern.permute.xlu1 %v1207_v22 }
  0x66   :  { %415 = vperm.xlu1 %1157, %v392_v12  }
  0x68   :  { %98 = vperm.xlu0 %1176, %v1305_v32  }
  0x6a   :  { %1158 = vset.pattern.permute.xlu1 %v1208_v26 }
  0x6b   :  { %178 = vperm.xlu1 %1158, %v153_v17  }
  0x6c   :  { %103 = vperm.xlu0 %1176, %v1338_v49  }
  0x6f   :  { %1159 = vset.pattern.permute.xlu1 %v1209_v31 }
  0x70   :  { %340 = vperm.xlu1 %1159, %v1271_v8  }
  0x74   :  { %344 = vperm.xlu1 %1159, %v1297_v28  }
  0x78   :  { %1161 = vset.pattern.permute.xlu1 %v1207_v22 }
  0x79   :  { %421 = vperm.xlu1 %1161, %v394_v19  }
  0x7d   :  { %1162 = vset.pattern.permute.xlu1 %v1210_v58  ;;  %v1422_v18 = vpop.permute.xlu0 %58 }
  0x7e   :  { %488 = vperm.xlu1 %1162, %v1258_v4  }
  0x81   :  { %v1425_v20 = vpop.permute.xlu0 %63 }
  0x82   :  { %1163 = vset.pattern.permute.xlu1 %v1205_v0 }
  0x83   :  { %v1428_v21 = vpop.permute.xlu1 %250  ;;  %73 = vperm.xlu1 %1163, %v1258_v4  }
  0x84   :  { %vm281_vm6 = vcmp.eq.s32.totalorder %v1495_v13, %v1428_v21  ;;  %v39_v21 = vsel %vm35_vm2, %v1266_v7, 0.0 }
  0x86   :  { %v1431_v23 = vpop.permute.xlu0 %412 }
  0x87   :  { %v1433_v24 = vpop.permute.xlu1 %253  ;;  %78 = vperm.xlu1 %1163, %v1321_v42  }
  0x88   :  { %vm282_vm3 = vcmp.eq.s32.totalorder %v1495_v13, %v1433_v24 }
  0x89   :  { %v986_v19 = vsel %vm282_vm3, 1.0, %v1211_v56 }
  0x8a   :  { %v1436_v25 = vpop.permute.xlu0 %418 }
  0x8b   :  { %1164 = vset.pattern.permute.xlu1 %v1210_v58 }
  0x8c   :  { %v1439_v27 = vpop.permute.xlu1 %163  ;;  %500 = vperm.xlu1 %1164, %v1297_v28  }
  0x8d   :  { %vm196_vm7 = vcmp.eq.s32.totalorder %v1495_v13, %v1439_v27 }
  0x8f   :  { %v1442_v29 = vpop.permute.xlu0 %244 }
  0x90   :  { %1165 = vset.pattern.permute.xlu1 %v1205_v0  ;;  %vm279_vm8 = vcmp.eq.s32.totalorder %v1495_v13, %v1442_v29  ;;  %v985_v29 = vsel %vm281_vm6, 1.0, %v1211_v56 }
  0x91   :  { %v1445_v30 = vpop.permute.xlu1 %316  ;;  %88 = vperm.xlu1 %1165, %v1297_v28   ;;  %v983_v7 = vsel %vm279_vm8, 1.0, %v1211_v56 }
  0x93   :  { %v248_v35 = vpop.permute.xlu0 %247 }
  0x94   :  { %vm280_vm1 = vcmp.eq.s32.totalorder %v1495_v13, %v248_v35 }
  0x95   :  { %1166 = vset.pattern.permute.xlu1 %v1206_v3  ;;  %v156_v3 = vadd.s32 46, %v1314_v39  ;;  %v984_v17 = vsel %vm280_vm1, 1.0, %v1211_v56 }
  0x96   :  { %268 = vperm.xlu1 %1166, %v239_v33   ;;  %v1451_v36 = vpop.permute.xlu1 %400 }
  0x97   :  { %v1454_v40 = vpop.permute.xlu0 %256  ;;  %vm435_vm15 = vcmp.eq.s32.totalorder %v1495_v13, %v1451_v36 }
  0x9a   :  { %274 = vperm.xlu1 %1166, %v241_v37   ;;  %v1456_v41 = vpop.permute.xlu1 %403  ;;  %v972_v37 = vsel %vm196_vm7, 1.0, %v1211_v56 }
  0x9b   :  { %v1458_v44 = vpop.permute.xlu0 %265  ;;  %vm436_vm10 = vcmp.eq.s32.totalorder %v1495_v13, %v1456_v41  ;;  %v363_v41 = vmul.f32 %v983_v7, %v1445_v30  ;;  %v995_v30 = vsel %vm435_vm15, 1.0, %v1211_v56 }
  0x9c   :  { %v996_v27 = vsel %vm436_vm10, 1.0, %v1211_v56  ;;  %vm286_vm1 = vcmp.eq.s32.totalorder %v1495_v13, %v1458_v44 }
  0x9e   :  { %277 = vperm.xlu1 %1166, %v242_v43  }
  0x9f   :  { %v1460_v45 = vpop.permute.xlu1 %169  ;;  %v272_v46 = vpop.permute.xlu0 %271 }
  0xa0   :  { %vm288_vm0 = vcmp.eq.s32.totalorder %v1495_v13, %v272_v46  ;;  %vm198_vm9 = vcmp.eq.s32.totalorder %v1495_v13, %v1460_v45 }
  0xa1   :  { %v992_v12 = vsel %vm288_vm0, 1.0, %v1211_v56  ;;  %v974_v38 = vsel %vm198_vm9, 1.0, %v1211_v56  ;;  %vm1574_vm0 = vmand %vm48_vm4, %vm49_vm5  ;;  %vm283_vm4 = vcmp.eq.s32.totalorder %v1495_v13, %v1454_v40  ;;  %vm439_vm5 = vcmp.eq.s32.totalorder %v1495_v13, %v1431_v23 }
  0xa2   :  { %1168 = vset.pattern.permute.xlu1 %v1208_v26 }
  0xa3   :  { %187 = vperm.xlu1 %1168, %v156_v3  }
  0xa4   :  { %v1464_v47 = vpop.permute.xlu1 %324  ;;  %v1466_v50 = vpop.permute.xlu0 %160 }
  0xa5   :  { %vm195_vm14 = vcmp.eq.s32.totalorder %v1495_v13, %v1466_v50 }
  0xa7   :  { %1169 = vset.pattern.permute.xlu1 %v1209_v31 }
  0xa8   :  { %348 = vperm.xlu1 %1169, %v1333_v48   ;;  %v1470_v51 = vpop.permute.xlu0 %166 }
  0xa9   :  { %v1472_v52 = vpop.permute.xlu1 %406  ;;  %vm197_vm11 = vcmp.eq.s32.totalorder %v1495_v13, %v1470_v51 }
  0xaa   :  { %vm437_vm12 = vcmp.eq.s32.totalorder %v1495_v13, %v1472_v52  ;;  %v973_v43 = vsel %vm197_vm11, 1.0, %v1211_v56  ;;  %vm441_vm11 = vcmp.eq.s32.totalorder %v1495_v13, %v1436_v25  ;;  %v42_v25 = vsel %vm35_vm2, %v1271_v8, 0.0 }
  0xab   :  { %v997_v3 = vsel %vm437_vm12, 1.0, %v1211_v56 }
  0xac   :  { %1170 = vset.pattern.permute.xlu1 %v1207_v22  ;;  %v1476_v54 = vpop.permute.xlu0 %175 }
  0xad   :  { %424 = vperm.xlu1 %1170, %v395_v53   ;;  %v1478_v57 = vpop.permute.xlu1 %409  ;;  %v365_v53 = vmul.f32 %v985_v29, %v1464_v47  ;;  %vm200_vm9 = vcmp.eq.s32.totalorder %v1495_v13, %v1476_v54  ;;  %v41_v54 = vsel %vm35_vm2, %v1321_v42, 0.0 }
  0xae   :  { %vm438_vm13 = vcmp.eq.s32.totalorder %v1495_v13, %v1478_v57  ;;  %v971_v57 = vsel %vm195_vm14, 1.0, %v1211_v56 }
  0xaf   :  { %v998_v51 = vsel %vm438_vm13, 1.0, %v1211_v56  ;;  %v377_v47 = vadd.f32 %v973_v43, %v365_v53  ;;  %v1193_v43 = vld [vmem:[%s1800_s3 + $0x28] sm:$0xff]  }
  0xb0   :  { %v1481_v60 = vpop.permute.xlu0 %181 }
  0xb1   :  { %427 = vperm.xlu1 %1170, %v396_v59   ;;  %vm202_vm3 = vcmp.eq.s32.totalorder %v1495_v13, %v1481_v60 }
  0xb2   :  { %v1483_v61 = vpop.permute.xlu1 %476 }
  0xb4   :  { %v1485_v63 = vpop.permute.xlu0 %184 }
  0xb5   :  { %1172 = vset.pattern.permute.xlu1 %v1208_v26  ;;  %vm203_vm15 = vcmp.eq.s32.totalorder %v1495_v13, %v1485_v63  ;;  %v45_v63 = vsel %vm35_vm2, %v1305_v32, 0.0 }
  0xb6   :  { %193 = vperm.xlu1 %1172, %v158_v62  }
  0xb7   :  { %v1488_v55 = vpop.permute.xlu1 %53 }
  0xb8   :  { %v1490_v5 = vpop.permute.xlu0 %190 }
  0xba   :  { %1173 = vset.pattern.permute.xlu1 %v1209_v31  ;;  %v1504_v31 = vsel %vm35_vm2, %v1247_v1, 0.0  ;;  %v36_v1 = vsel %vm35_vm2, %v1283_v15, 0.0 }
  0xbb   :  { %356 = vperm.xlu1 %1173, %v1338_v49   ;;  %v112_v35 = vmul.f32 %v1422_v18, %v1504_v31 }
  0xbc   :  { %v481_v39 = vpop.permute.xlu1 %480 }
  0xbd   :  { %v321_v11 = vpop.permute.xlu0 %320  ;;  %v521_v59 = vmul.f32 %v997_v3, %v481_v39  ;;  %v111_v39 = vmul.f32 %v1488_v55, %v36_v1  ;;  %v124_v55 = vsel %vm1574_vm0, %v112_v35, %v1504_v31  ;;  %v1192_v35 = vld [vmem:[%s1800_s3 + $0x30] sm:$0xff]   ;;  %v1195_v3 = vld [vmem:[%s1800_s3 + $0x18] sm:$0xff]  }
  0xbe   :  { %v364_v15 = vmul.f32 %v984_v17, %v321_v11  ;;  %v1201_v11 = vld [vmem:[%s1798_s0 + $0x10] sm:$0xff] }
  0xbf   :  { %1175 = vset.pattern.permute.xlu1 %v1207_v22  ;;  %v1509_v22 = vsel %vm35_vm2, %v1252_v2, 0.0  ;;  %v123_v36 = vsel %vm1574_vm0, %v111_v39, %v36_v1 }
  0xc0   :  { %430 = vperm.xlu1 %1175, %v397_v10   ;;  %v485_v26 = vpop.permute.xlu1 %484  ;;  %v376_v50 = vadd.f32 %v972_v37, %v364_v15  ;;  %v113_v6 = vmul.f32 %v1425_v20, %v1509_v22  ;;  %v520_v10 = vmul.f32 %v996_v27, %v1483_v61  ;;  %v1194_v27 = vld [vmem:[%s1800_s3 + $0x20] sm:$0xff]  }
  0xc1   :  { %v329_v16 = vpop.permute.xlu0 %328  ;;  %v522_v62 = vmul.f32 %v998_v51, %v485_v26  ;;  %v978_v51 = vsel %vm202_vm3, 1.0, %v1211_v56 }
  0xc2   :  { %v366_v33 = vmul.f32 %v986_v19, %v329_v16  ;;  %v532_v17 = vadd.f32 %v520_v10, %v376_v50  ;;  %v533_v19 = vadd.f32 %v521_v59, %v377_v47  ;;  %v990_v50 = vsel %vm286_vm1, 1.0, %v1211_v56 }
  0xc4   :  { %433 = vperm.xlu1 %1175, %v398_v14   ;;  %v378_v45 = vadd.f32 %v974_v38, %v366_v33  ;;  %v375_v14 = vadd.f32 %v971_v57, %v363_v41  ;;  %v544_v29 = vadd.f32 %v532_v17, %v124_v55  ;;  %v987_v57 = vsel %vm283_vm4, 1.0, %v1211_v56 }
  0xc5   :  { %v69_v2 = vpop.permute.xlu1 %68  ;;  %v353_v24 = vpop.permute.xlu0 %352 }
  0xc6   :  { %v1525_v34 = vmul.f32 %v992_v12, %v353_v24  ;;  %v114_v52 = vmul.f32 %v69_v2, %v39_v21  ;;  %v534_v26 = vadd.f32 %v522_v62, %v378_v45  ;;  %v125_v2 = vsel %vm1574_vm0, %v113_v6, %v1509_v22  ;;  %v1191_v22 = vld [vmem:[%s1800_s3 + $0x38] sm:$0xff]  }
  0xc7   :  { %v545_v37 = vadd.f32 %v533_v19, %v125_v2  ;;  %1081 = vmatprep.subr.bf16.mxu1 %v1191_v22  ;;  %v999_v6 = vsel %vm439_vm5, 1.0, %v1211_v56 }
  0xc8   :  { %1177 = vset.pattern.permute.xlu1 %v1210_v58  ;;  %v126_v16 = vsel %vm1574_vm0, %v114_v52, %v39_v21  ;;  %1082 = vmatpush3.bf16.msra.mxu1 %v1191_v22 }
  0xc9   :  { %508 = vperm.xlu1 %1177, %v1305_v32   ;;  %v1550_v18 = vpop.permute.xlu0 %360  ;;  %v546_v33 = vadd.f32 %v534_v26, %v126_v16  ;;  %1083 = vmatprep.subr.bf16.mxu1 %v1192_v35  ;;  %v40_v26 = vsel %vm35_vm2, %v1258_v4, 0.0 }
  0xca   :  { %v1559_v46 = vpop.permute.xlu1 %259 }
  0xcb   :  { %v556_v38 = vpack.c.bf16 %v546_v33, %v545_v37  ;;  %vm284_vm7 = vcmp.eq.s32.totalorder %v1495_v13, %v1559_v46  ;;  %v976_v46 = vsel %vm200_vm9, 1.0, %v1211_v56 }
  0xcc   :  { %1084 = vmatpush3.bf16.msra.mxu1 %v1192_v35 }
  0xcd   :  { %1178 = vset.pattern.permute.xlu1 %v1205_v0  ;;  %1085 = vmatprep.subr.bf16.mxu1 %v1193_v43 }
  0xce   :  { %93 = vperm.xlu1 %1178, %v1333_v48   ;;  %v1580_v20 = vpop.permute.xlu1 %262  ;;  %v473_v61 = vpop.permute.xlu0 %472 }
  0xcf   :  { %v519_v12 = vmul.f32 %v995_v30, %v473_v61  ;;  %v988_v30 = vsel %vm284_vm7, 1.0, %v1211_v56  ;;  %vm285_vm10 = vcmp.eq.s32.totalorder %v1495_v13, %v1580_v20 }
  0xd0   :  { %1086 = vmatpush3.bf16.msra.mxu1 %v1193_v43  ;;  %v989_v2 = vsel %vm285_vm10, 1.0, %v1211_v56 }
  0xd1   :  { %v531_v24 = vadd.f32 %v519_v12, %v375_v14  ;;  %1087 = vmatprep.subr.bf16.mxu1 %v1194_v27 }
  0xd2   :  { %1179 = vset.pattern.permute.xlu1 %v1210_v58  ;;  %v493_v60 = vpop.permute.xlu0 %492 }
  0xd3   :  { %512 = vperm.xlu1 %1179, %v1338_v49   ;;  %v173_v15 = vpop.permute.xlu1 %172  ;;  %v543_v21 = vadd.f32 %v531_v24, %v123_v36 }
  0xd4   :  { %1088 = vmatpush3.bf16.msra.mxu1 %v1194_v27  ;;  %vm199_vm6 = vcmp.eq.s32.totalorder %v1495_v13, %v173_v15  ;;  %v1001_v15 = vsel %vm441_vm11, 1.0, %v1211_v56  ;;  %v43_v27 = vsel %vm35_vm2, %v1297_v28, 0.0 }
  0xd5   :  { %v555_v7 = vpack.c.bf16 %v544_v29, %v543_v21  ;;  %1089 = vmatprep.subr.bf16.mxu1 %v1195_v3  ;;  %v975_v41 = vsel %vm199_vm6, 1.0, %v1211_v56 }
  0xd6   :  { %v497_v47 = vpop.permute.xlu0 %496 }
  0xd7   :  { %516 = vperm.xlu1 %1179, %v1386_v9   ;;  %1069 = vmatprep.mubr.bf16.mxu0 %v555_v7 }
  0xd8   :  { %v333_v31 = vpop.permute.xlu1 %332  ;;  %1070 = vmatmul.mubr.bf16.vlgmr.msra.gmra.mxu0 %v556_v38  ;;  %1090 = vmatpush3.bf16.msra.mxu1 %v1195_v3 }
  0xd9   :  { %v367_v62 = vmul.f32 %v987_v57, %v333_v31 }
  0xda   :  { %v505_v19 = vpop.permute.xlu0 %504 }
  0xdb   :  { %1180 = vset.pattern.permute.xlu1 %v1205_v0  ;;  %v379_v40 = vadd.f32 %v975_v41, %v367_v62 }
  0xdc   :  { %108 = vperm.xlu1 %1180, %v1386_v9   ;;  %v337_v58 = vpop.permute.xlu1 %336 }
  0xdd   :  { %v368_v14 = vmul.f32 %v988_v30, %v337_v58  ;;  %v525_v58 = vmul.f32 %v1001_v15, %v497_v47  ;;  %v979_v30 = vsel %vm203_vm15, 1.0, %v1211_v56 }
  0xdf   :  { %v380_v4 = vadd.f32 %v976_v46, %v368_v14  ;;  %v84_v29 = vpop.permute.xlu0 %83 }
  0xe0   :  { %v117_v35 = vmul.f32 %v84_v29, %v42_v25 }
  0xe1   :  { %v416_v1 = vpop.permute.xlu1 %415 }
  0xe2   :  { %vm440_vm8 = vcmp.eq.s32.totalorder %v1495_v13, %v416_v1  ;;  %v129_v3 = vsel %vm1574_vm0, %v117_v35, %v42_v25 }
  0xe3   :  { %v1000_v61 = vsel %vm440_vm8, 1.0, %v1211_v56  ;;  %vm205_vm8 = vcmp.eq.s32.totalorder %v1495_v13, %v1490_v5 }
  0xe4   :  { %v524_v17 = vmul.f32 %v1000_v61, %v493_v60  ;;  %v981_v5 = vsel %vm205_vm8, 1.0, %v1211_v56 }
  0xe6   :  { %v1610_v0 = vpop.permute.xlu1 %178  ;;  %v536_v36 = vadd.f32 %v524_v17, %v380_v4 }
  0xe7   :  { %vm201_vm12 = vcmp.eq.s32.totalorder %v1495_v13, %v1610_v0 }
  0xe8   :  { %v977_v38 = vsel %vm201_vm12, 1.0, %v1211_v56 }
  0xeb   :  { %v341_v45 = vpop.permute.xlu1 %340 }
  0xec   :  { %v369_v20 = vmul.f32 %v989_v2, %v341_v45  ;;  %v99_v2 = vpop.permute.xlu0 %98 }
  0xee   :  { %v381_v22 = vadd.f32 %v977_v38, %v369_v20  ;;  %v120_v20 = vmul.f32 %v99_v2, %v45_v63 }
  0xef   :  { %v345_v52 = vpop.permute.xlu1 %344 }
  0xf0   :  { %v370_v44 = vmul.f32 %v990_v50, %v345_v52  ;;  %v537_v8 = vadd.f32 %v525_v58, %v381_v22 }
  0xf2   :  { %v382_v53 = vadd.f32 %v978_v51, %v370_v44  ;;  %v549_v44 = vadd.f32 %v537_v8, %v129_v3 }
  0xf4   :  { %v422_v59 = vpop.permute.xlu1 %421 }
  0xf5   :  { %vm442_vm13 = vcmp.eq.s32.totalorder %v1495_v13, %v422_v59 }
  0xf6   :  { %v1002_v43 = vsel %vm442_vm13, 1.0, %v1211_v56 }
  0xf9   :  { %v489_v10 = vpop.permute.xlu1 %488 }
  0xfa   :  { %v523_v39 = vmul.f32 %v999_v6, %v489_v10  ;;  %v1196_v6 = vld [vmem:[%s1800_s3 + $0x10] sm:$0xff]  }
  0xfb   :  { %1091 = vmatprep.subr.bf16.mxu1 %v1196_v6 }
  0xfc   :  { %v535_v23 = vadd.f32 %v523_v39, %v379_v40  ;;  %1092 = vmatpush3.bf16.msra.mxu1 %v1196_v6  ;;  %v1198_v40 = vld [vmem:[%s1800_s3] sm:$0xff]  }
  0xfe   :  { %v74_v16 = vpop.permute.xlu1 %73 }
  0xff   :  { %v115_v12 = vmul.f32 %v74_v16, %v40_v26 }
 0x101   :  { %v127_v24 = vsel %vm1574_vm0, %v115_v12, %v40_v26 }
 0x102   :  { %v79_v55 = vpop.permute.xlu1 %78  ;;  %v547_v37 = vadd.f32 %v535_v23, %v127_v24 }
 0x103   :  { %v116_v33 = vmul.f32 %v79_v55, %v41_v54 }
 0x105   :  { %v128_v21 = vsel %vm1574_vm0, %v116_v33, %v41_v54 }
 0x106   :  { %v548_v7 = vadd.f32 %v536_v36, %v128_v21  ;;  %v44_v21 = vsel %vm35_vm2, %v1333_v48, 0.0 }
 0x107   :  { %v501_v31 = vpop.permute.xlu1 %500 }
 0x108   :  { %v557_v1 = vpack.c.bf16 %v548_v7, %v547_v37  ;;  %v526_v0 = vmul.f32 %v1002_v43, %v501_v31  ;;  %v132_v37 = vsel %vm1574_vm0, %v120_v20, %v45_v63  ;;  %v46_v43 = vsel %vm35_vm2, %v1338_v49, 0.0 }
 0x10a   :  { %1073 = vmatprep.mubr.bf16.mxu0 %v557_v1  ;;  %v538_v51 = vadd.f32 %v526_v0, %v382_v53  ;;  %v1197_v53 = vld [vmem:[%s1800_s3 + $0x8] sm:$0xff]   ;;  %v104_v0 = vpop.permute.xlu0 %103 }
 0x10b   :  { %1093 = vmatprep.subr.bf16.mxu1 %v1197_v53 }
 0x10c   :  { %v89_v45 = vpop.permute.xlu1 %88  ;;  %1094 = vmatpush3.bf16.msra.mxu1 %v1197_v53 }
 0x10d   :  { %v118_v50 = vmul.f32 %v89_v45, %v43_v27  ;;  %1095 = vmatprep.subr.bf16.mxu1 %v1198_v40 }
 0x10f   :  { %v130_v52 = vsel %vm1574_vm0, %v118_v50, %v43_v27 }
 0x110   :  { %v550_v57 = vadd.f32 %v538_v51, %v130_v52  ;;  %1096 = vmatpush3.bf16.msra.mxu1 %v1198_v40  ;;  %v121_v51 = vmul.f32 %v104_v0, %v46_v43 }
 0x111   :  { %v269_v60 = vpop.permute.xlu1 %268 }
 0x112   :  { %v558_v59 = vpack.c.bf16 %v550_v57, %v549_v44  ;;  %vm287_vm14 = vcmp.eq.s32.totalorder %v1495_v13, %v269_v60  ;;  %v47_v60 = vsel %vm35_vm2, %v1386_v9, 0.0 }
 0x113   :  { %v991_v39 = vsel %vm287_vm14, 1.0, %v1211_v56 }
 0x114   :  { %1074 = vmatmul.mubr.bf16.gmra.mxu0 %v558_v59 }
 0x115   :  { %v275_v62 = vpop.permute.xlu1 %274 }
 0x116   :  { %vm289_vm5 = vcmp.eq.s32.totalorder %v1495_v13, %v275_v62 }
 0x117   :  { %v993_v1 = vsel %vm289_vm5, 1.0, %v1211_v56 }
 0x119   :  { %v278_v41 = vpop.permute.xlu1 %277 }
 0x11a   :  { %vm290_vm6 = vcmp.eq.s32.totalorder %v1495_v13, %v278_v41  ;;  %v133_v41 = vsel %vm1574_vm0, %v121_v51, %v46_v43 }
 0x11b   :  { %v994_v27 = vsel %vm290_vm6, 1.0, %v1211_v56 }
 0x11e   :  { %v188_v10 = vpop.permute.xlu1 %187 }
 0x11f   :  { %vm204_vm3 = vcmp.eq.s32.totalorder %v1495_v13, %v188_v10 }
 0x120   :  { %v980_v24 = vsel %vm204_vm3, 1.0, %v1211_v56 }
 0x121   :  { %v384_v15 = vadd.f32 %v980_v24, %v1525_v34 }
 0x123   :  { %v349_v47 = vpop.permute.xlu1 %348 }
 0x124   :  { %v371_v23 = vmul.f32 %v991_v39, %v349_v47 }
 0x126   :  { %v383_v14 = vadd.f32 %v979_v30, %v371_v23  ;;  %v1199_v23 = vld [vmem:[%s1798_s0 + $0x8] sm:$0xff]  ;;  %v1202_v30 = vld [vmem:[%s1798_s0 + $0x18] sm:$0xff] }
 0x128   :  { %v425_v26 = vpop.permute.xlu1 %424 }
 0x129   :  { %vm443_vm1 = vcmp.eq.s32.totalorder %v1495_v13, %v425_v26  ;;  %v1200_v26 = vld [vmem:[%s1798_s0] sm:$0xff] }
 0x12a   :  { %v1003_v61 = vsel %vm443_vm1, 1.0, %v1211_v56 }
 0x12b   :  { %v527_v16 = vmul.f32 %v1003_v61, %v505_v19  ;;  %v1203_v61 = vld [vmem:[%s1798_s0 + $0x20] sm:$0xff] }
 0x12c   :  { %v428_v46 = vpop.permute.xlu1 %427 }
 0x12d   :  { %v539_v12 = vadd.f32 %v527_v16, %v383_v14  ;;  %vm444_vm4 = vcmp.eq.s32.totalorder %v1495_v13, %v428_v46  ;;  %v1204_v14 = vld [vmem:[%s1798_s0 + $0x30] sm:$0xff] }
 0x12e   :  { %v1004_v33 = vsel %vm444_vm4, 1.0, %v1211_v56 }
 0x131   :  { %v194_v17 = vpop.permute.xlu1 %193 }
 0x132   :  { %vm206_vm9 = vcmp.eq.s32.totalorder %v1495_v13, %v194_v17 }
 0x133   :  { %v982_v50 = vsel %vm206_vm9, 1.0, %v1211_v56 }
 0x136   :  { %v357_v54 = vpop.permute.xlu1 %356 }
 0x137   :  { %v373_v35 = vmul.f32 %v993_v1, %v357_v54 }
 0x139   :  { %v385_v44 = vadd.f32 %v981_v5, %v373_v35 }
 0x13b   :  { %v431_v4 = vpop.permute.xlu1 %430 }
 0x13c   :  { %vm445_vm7 = vcmp.eq.s32.totalorder %v1495_v13, %v431_v4 }
 0x13d   :  { %v1005_v8 = vsel %vm445_vm7, 1.0, %v1211_v56 }
 0x13f   :  { %v434_v55 = vpop.permute.xlu1 %433 }
 0x140   :  { %vm446_vm10 = vcmp.eq.s32.totalorder %v1495_v13, %v434_v55  ;;  %v374_v13 = vmul.f32 %v994_v27, %v1550_v18  ;;  %v1212_v18 = vmov 45  }
 0x141   :  { %v1006_v52 = vsel %vm446_vm10, 1.0, %v1211_v56  ;;  %1182 = vset.pattern.permute.xlu1 %v1212_v18  ;;  %1181 = vset.pattern.permute.xlu0 %v1212_v18 }
 0x142   :  { %v386_v59 = vadd.f32 %v982_v50, %v374_v13  ;;  %900 = vperm.xlu1 %1182, %v1199_v23   ;;  %896 = vperm.xlu0 %1181, %v1200_v26  }
 0x144   :  { %v509_v36 = vpop.permute.xlu1 %508 }
 0x145   :  { %v528_v19 = vmul.f32 %v1004_v33, %v509_v36 }
 0x146   :  { %904 = vperm.xlu1 %1182, %v1201_v11   ;;  %908 = vperm.xlu0 %1181, %v1202_v30  }
 0x147   :  { %v540_v25 = vadd.f32 %v528_v19, %v384_v15 }
 0x149   :  { %v94_v29 = vpop.permute.xlu1 %93  ;;  %v552_v31 = vadd.f32 %v540_v25, %v132_v37 }
 0x14a   :  { %v119_v7 = vmul.f32 %v94_v29, %v44_v21  ;;  %912 = vperm.xlu1 %1182, %v1203_v61   ;;  %916 = vperm.xlu0 %1181, %v1321_v42   ;;  %v1007_v42 = vld [vmem:[%s1801_s2] ss:$0 sm:$0xff] }
 0x14c   :  { %v131_v38 = vsel %vm1574_vm0, %v119_v7, %v44_v21 }
 0x14d   :  { %v551_v58 = vadd.f32 %v539_v12, %v131_v38 }
 0x14e   :  { %v513_v22 = vpop.permute.xlu1 %512  ;;  %920 = vperm.xlu1 %1182, %v1204_v14   ;;  %924 = vperm.xlu0 %1181, %v1297_v28  }
 0x14f   :  { %v559_v34 = vpack.c.bf16 %v552_v31, %v551_v58  ;;  %v529_v3 = vmul.f32 %v1005_v8, %v513_v22 }
 0x151   :  { %1077 = vmatprep.mubr.bf16.mxu0 %v559_v34  ;;  %v541_v62 = vadd.f32 %v529_v3, %v385_v44  ;;  %v1748_v44 = vld [vmem:[%s1802_s4] ss:$0 sm:$0xff] }
 0x152   :  { %v517_v45 = vpop.permute.xlu1 %516  ;;  %928 = vperm.xlu1 %1182, %v1333_v48   ;;  %932 = vperm.xlu0 %1181, %v1305_v32  }
 0x153   :  { %v530_v57 = vmul.f32 %v1006_v52, %v517_v45  ;;  %v553_v47 = vadd.f32 %v541_v62, %v133_v41 }
 0x155   :  { %v542_v10 = vadd.f32 %v530_v57, %v386_v59 }
 0x156   :  { %936 = vperm.xlu1 %1182, %v1338_v49   ;;  %940 = vperm.xlu0 %1181, %v1386_v9  }
 0x157   :  { %v109_v6 = vpop.permute.xlu1 %108 }
 0x158   :  { %v122_v53 = vmul.f32 %v109_v6, %v47_v60 }
 0x15a   :  { %v134_v40 = vsel %vm1574_vm0, %v122_v53, %v47_v60 }
 0x15b   :  { %v554_v56 = vadd.f32 %v542_v10, %v134_v40 }
 0x15d   :  { %v560_v39 = vpack.c.bf16 %v554_v56, %v553_v47 }
 0x15f   :  { %1078 = vmatmul.mubr.bf16.gmra.mxu0 %v560_v39 }
 0x198   :  { %v1071_v16 = vpop.f32.mrf.mxu0 }
 0x199   :  { %v675_v4 = vadd.f32 %v1071_v16, %v1007_v42 }
 0x19a   :  { %v666_v46 = vpop.f32.mrf.mxu0 }
 0x19b   :  { %v667_v17 = vadd.f32 %v1007_v42, %v666_v46  ;;  %v715_v32 = vmax.f32 %v675_v4, 0.0 }
 0x19c   :  { %v1072_v12 = vpop.f32.mrf.mxu0 }
 0x19d   :  { %v678_v54 = vadd.f32 %v1072_v12, %v1007_v42  ;;  %v713_v48 = vmax.f32 %v667_v17, 0.0 }
 0x19e   :  { %v669_v55 = vpop.f32.mrf.mxu0 }
 0x19f   :  { %v670_v28 = vadd.f32 %v1007_v42, %v669_v55  ;;  %v716_v63 = vmax.f32 %v678_v54, 0.0 }
 0x1a1   :  { %v714_v2 = vmax.f32 %v670_v28, 0.0  ;;  %v726_v49 = vpack.c.bf16 %v716_v63, %v715_v32 }
 0x1a3   :  { %v725_v24 = vpack.c.bf16 %v714_v2, %v713_v48 }
 0x1a5   :  { %1097 = vmatprep.mubr.bf16.mxu1 %v725_v24 }
 0x1a6   :  { %1098 = vmatmul.mubr.bf16.vlgmr.msra.gmra.mxu1 %v726_v49 }
 0x1bd   :  { %v901_v13 = vpop.permute.xlu1 %900  ;;  %v897_v60 = vpop.permute.xlu0 %896 }
 0x1c1   :  { %v905_v6 = vpop.permute.xlu1 %904  ;;  %v909_v18 = vpop.permute.xlu0 %908 }
 0x1c5   :  { %v913_v16 = vpop.permute.xlu1 %912 }
 0x1c9   :  { %v921_v54 = vpop.permute.xlu1 %920 }
 0x1d4   :  { %v1075_v9 = vpop.f32.mrf.mxu0 }
 0x1d5   :  { %v691_v15 = vadd.f32 %v1075_v9, %v1007_v42 }
 0x1d6   :  { %v682_v33 = vpop.f32.mrf.mxu0 }
 0x1d7   :  { %v683_v19 = vadd.f32 %v1007_v42, %v682_v33  ;;  %v719_v38 = vmax.f32 %v691_v15, 0.0  ;;  %v929_v15 = vpop.permute.xlu1 %928 }
 0x1d8   :  { %v1076_v36 = vpop.f32.mrf.mxu0 }
 0x1d9   :  { %v694_v20 = vadd.f32 %v1076_v36, %v1007_v42  ;;  %v717_v37 = vmax.f32 %v683_v19, 0.0 }
 0x1da   :  { %v685_v21 = vpop.f32.mrf.mxu0 }
 0x1db   :  { %v686_v25 = vadd.f32 %v1007_v42, %v685_v21  ;;  %v720_v29 = vmax.f32 %v694_v20, 0.0 }
 0x1dd   :  { %v718_v7 = vmax.f32 %v686_v25, 0.0  ;;  %v728_v58 = vpack.c.bf16 %v720_v29, %v719_v38 }
 0x1df   :  { %v727_v31 = vpack.c.bf16 %v718_v7, %v717_v37 }
 0x1e1   :  { %1101 = vmatprep.mubr.bf16.mxu1 %v727_v31  ;;  %v937_v31 = vpop.permute.xlu1 %936 }
 0x1e2   :  { %1102 = vmatmul.mubr.bf16.gmra.mxu1 %v728_v58 }
 0x21f   :  { %v1079_v22 = vpop.f32.mrf.mxu0 }
 0x220   :  { %v707_v0 = vadd.f32 %v1079_v22, %v1007_v42 }
 0x221   :  { %v698_v34 = vpop.f32.mrf.mxu0 }
 0x222   :  { %v699_v35 = vadd.f32 %v1007_v42, %v698_v34  ;;  %v723_v50 = vmax.f32 %v707_v0, 0.0 }
 0x223   :  { %v1080_v1 = vpop.f32.mrf.mxu0 }
 0x224   :  { %v710_v43 = vadd.f32 %v1080_v1, %v1007_v42  ;;  %v721_v3 = vmax.f32 %v699_v35, 0.0 }
 0x225   :  { %v701_v27 = vpop.f32.mrf.mxu0 }
 0x226   :  { %v702_v8 = vadd.f32 %v1007_v42, %v701_v27  ;;  %v724_v45 = vmax.f32 %v710_v43, 0.0  ;;  %v917_v42 = vpop.permute.xlu0 %916 }
 0x228   :  { %v722_v5 = vmax.f32 %v702_v8, 0.0  ;;  %v730_v52 = vpack.c.bf16 %v724_v45, %v723_v50 }
 0x22a   :  { %v729_v51 = vpack.c.bf16 %v722_v5, %v721_v3  ;;  %v925_v24 = vpop.permute.xlu0 %924 }
 0x22c   :  { %1105 = vmatprep.mubr.bf16.mxu1 %v729_v51 }
 0x22d   :  { %1106 = vmatmul.mubr.bf16.gmra.mxu1 %v730_v52 }
 0x22e   :  { %v933_v29 = vpop.permute.xlu0 %932 }
 0x232   :  { %v941_v8 = vpop.permute.xlu0 %940 }
 0x266   :  { %v1099_v57 = vpop.f32.mrf.mxu1 }
 0x267   :  { %v845_v59 = vadd.f32 %v1099_v57, %v1748_v44 }
 0x268   :  { %v836_v62 = vpop.f32.mrf.mxu1 }
 0x269   :  { %v885_v41 = vmax.f32 %v845_v59, 0.0  ;;  %v837_v53 = vadd.f32 %v1748_v44, %v836_v62 }
 0x26a   :  { %v1100_v10 = vpop.f32.mrf.mxu1 }
 0x26b   :  { %v883_v40 = vmax.f32 %v837_v53, 0.0  ;;  %v945_v47 = vmul.f32 %v905_v6, %v885_v41  ;;  %v848_v56 = vadd.f32 %v1100_v10, %v1748_v44 }
 0x26c   :  { %v839_v39 = vpop.f32.mrf.mxu1 }
 0x26d   :  { %957 = vst [vmem:[%s1803_s5 + $0x10] sm:$0xff] %v945_v47  ;;  %v943_v23 = vmul.f32 %v897_v60, %v883_v40  ;;  %v886_v26 = vmax.f32 %v848_v56, 0.0  ;;  %v840_v11 = vadd.f32 %v1748_v44, %v839_v39 }
 0x26f   :  { %955 = vst [vmem:[%s1803_s5] sm:$0xff] %v943_v23  ;;  %v884_v30 = vmax.f32 %v840_v11, 0.0  ;;  %v946_v61 = vmul.f32 %v909_v18, %v886_v26 }
 0x271   :  { %v944_v14 = vmul.f32 %v901_v13, %v884_v30  ;;  %958 = vst [vmem:[%s1803_s5 + $0x18] sm:$0xff] %v946_v61 }
 0x273   :  { %956 = vst [vmem:[%s1803_s5 + $0x8] sm:$0xff] %v944_v14 }
 0x2a2   :  { %v1103_v46 = vpop.f32.mrf.mxu1 }
 0x2a3   :  { %v861_v12 = vadd.f32 %v1103_v46, %v1748_v44 }
 0x2a4   :  { %v852_v17 = vpop.f32.mrf.mxu1 }
 0x2a5   :  { %v889_v4 = vmax.f32 %v861_v12, 0.0  ;;  %v853_v55 = vadd.f32 %v1748_v44, %v852_v17 }
 0x2a6   :  { %v1104_v28 = vpop.f32.mrf.mxu1 }
 0x2a7   :  { %v887_v63 = vmax.f32 %v853_v55, 0.0  ;;  %v949_v48 = vmul.f32 %v921_v54, %v889_v4  ;;  %v864_v2 = vadd.f32 %v1104_v28, %v1748_v44 }
 0x2a8   :  { %v855_v32 = vpop.f32.mrf.mxu1 }
 0x2a9   :  { %v947_v49 = vmul.f32 %v913_v16, %v887_v63  ;;  %961 = vst [vmem:[%s1803_s5 + $0x30] sm:$0xff] %v949_v48  ;;  %v890_v9 = vmax.f32 %v864_v2, 0.0  ;;  %v856_v33 = vadd.f32 %v1748_v44, %v855_v32 }
 0x2ab   :  { %959 = vst [vmem:[%s1803_s5 + $0x20] sm:$0xff] %v947_v49  ;;  %v888_v36 = vmax.f32 %v856_v33, 0.0  ;;  %v950_v19 = vmul.f32 %v925_v24, %v890_v9 }
 0x2ad   :  { %v948_v20 = vmul.f32 %v917_v42, %v888_v36  ;;  %962 = vst [vmem:[%s1803_s5 + $0x38] sm:$0xff] %v950_v19 }
 0x2af   :  { %960 = vst [vmem:[%s1803_s5 + $0x28] sm:$0xff] %v948_v20 }
 0x2ed   :  { %v1107_v21 = vpop.f32.mrf.mxu1 }
 0x2ee   :  { %v877_v25 = vadd.f32 %v1107_v21, %v1748_v44 }
 0x2ef   :  { %v868_v37 = vpop.f32.mrf.mxu1 }
 0x2f0   :  { %v893_v7 = vmax.f32 %v877_v25, 0.0  ;;  %v869_v38 = vadd.f32 %v1748_v44, %v868_v37 }
 0x2f1   :  { %v1108_v58 = vpop.f32.mrf.mxu1 }
 0x2f2   :  { %v953_v22 = vmul.f32 %v937_v31, %v893_v7  ;;  %v891_v34 = vmax.f32 %v869_v38, 0.0  ;;  %v880_v1 = vadd.f32 %v1108_v58, %v1748_v44 }
 0x2f3   :  { %v871_v35 = vpop.f32.mrf.mxu1 }
 0x2f4   :  { %965 = vst [vmem:[%s1803_s5 + $0x50] sm:$0xff] %v953_v22  ;;  %v951_v43 = vmul.f32 %v929_v15, %v891_v34  ;;  %v894_v0 = vmax.f32 %v880_v1, 0.0  ;;  %v872_v27 = vadd.f32 %v1748_v44, %v871_v35 }
 0x2f6   :  { %963 = vst [vmem:[%s1803_s5 + $0x40] sm:$0xff] %v951_v43  ;;  %v954_v45 = vmul.f32 %v941_v8, %v894_v0  ;;  %v892_v3 = vmax.f32 %v872_v27, 0.0 }
 0x2f8   :  { %966 = vst [vmem:[%s1803_s5 + $0x58] sm:$0xff] %v954_v45  ;;  %v952_v5 = vmul.f32 %v933_v29, %v892_v3 }
 0x2fa   :  { %964 = vst [vmem:[%s1803_s5 + $0x48] sm:$0xff] %v952_v5 }

</bundles_post_ra>
